<compile_context>
chip_gen: v7x
topology: tpu7x:2x2x1
jax: 0.10.0
libtpu: 0.0.40
codegen_flags: <defaults>
</compile_context>

<pallas_src>
import functools

import jax
import jax.numpy as jnp
from jax.experimental import pallas as pl
from jax.experimental.pallas import tpu as pltpu


def _affine(w, b, x):
    """w: [out, in], b: [out, 1], x: [in, Bt] -> [out, Bt] via VPU broadcast-FMA."""
    acc = w[:, 0:1] * x[0:1, :]
    for k in range(1, w.shape[1]):            # in_dim is 2 or 4 -> fully unrolled
        acc = acc + w[:, k:k + 1] * x[k:k + 1, :]
    return acc + b


def _mlp_kernel(y_ref, w1_ref, b1_ref, w2_ref, b2_ref, w3_ref, b3_ref, o_ref):
    y = y_ref[...].astype(jnp.float32)        # [y_dim, Bt], batch on lanes
    h1 = jnp.tanh(_affine(w1_ref[...], b1_ref[...], y))
    h2 = jnp.tanh(_affine(w2_ref[...], b2_ref[...], h1))
    out = _affine(w3_ref[...], b3_ref[...], h2)
    o_ref[...] = out.astype(o_ref.dtype)


@functools.partial(jax.jit, static_argnames=("block_b",))
def ode_func_sin_forward(t, y, params, *, block_b=2048):
    """Pallas forward of ODEFunc_Sin.forward(t, y). `t` is unused (matches ref).

    y: [B, y_dim]. params are in PyTorch layout: w [out, in], b [out].
    """
    del t  # forward ignores t, exactly like the PyTorch module
    w1, b1, w2, b2, w3, b3 = params
    B, y_dim = y.shape
    n_hidden = w1.shape[0]

    LANE = 128
    block_b = max(LANE, (block_b // LANE) * LANE)     # lane-multiple tile width
    b_pad_min = LANE * pl.cdiv(B, LANE)
    if b_pad_min <= block_b:
        block = b_pad_min                             # single grid step
        Bp = b_pad_min
    else:
        block = block_b
        Bp = block * pl.cdiv(B, block)
    grid = (Bp // block,)

    # Batch onto the lane (last) axis; zero-pad the batch to the tiled extent.
    yt = y.T                                          # [y_dim, B]
    if Bp != B:
        yt = jnp.pad(yt, ((0, 0), (0, Bp - B)))

    b1c = b1.reshape(n_hidden, 1)
    b2c = b2.reshape(n_hidden, 1)
    b3c = b3.reshape(y_dim, 1)

    full = lambda r, c: pl.BlockSpec((r, c), lambda i: (0, 0))

    out_t = pl.pallas_call(
        _mlp_kernel,
        out_shape=jax.ShapeDtypeStruct((y_dim, Bp), y.dtype),
        grid_spec=pl.GridSpec(
            grid=grid,
            in_specs=[
                pl.BlockSpec((y_dim, block), lambda i: (0, i)),   # y tile
                full(n_hidden, y_dim),                            # w1
                full(n_hidden, 1),                                # b1
                full(n_hidden, n_hidden),                         # w2
                full(n_hidden, 1),                                # b2
                full(y_dim, n_hidden),                            # w3
                full(y_dim, 1),                                   # b3
            ],
            out_specs=pl.BlockSpec((y_dim, block), lambda i: (0, i)),
        ),
        compiler_params=pltpu.CompilerParams(
            dimension_semantics=("parallel",),
        ),
    )(yt, w1, b1c, w2, b2c, w3, b3c)

    return out_t[:, :B].T                             # back to [B, y_dim]


def init_params(key, y_dim=2, n_hidden=4, dtype=jnp.float32):
    """Deterministic init mimicking PyTorch nn.Linear defaults, PyTorch layout."""
    def linear(k, fan_in, fan_out):
        kw, kb = jax.random.split(k)
        bound = 1.0 / jnp.sqrt(jnp.asarray(fan_in, dtype))
        w = jax.random.uniform(kw, (fan_out, fan_in), dtype, -bound, bound)  # [out, in]
        b = jax.random.uniform(kb, (fan_out,), dtype, -bound, bound)         # [out]
        return w, b

    k1, k2, k3 = jax.random.split(key, 3)
    w1, b1 = linear(k1, y_dim, n_hidden)
    w2, b2 = linear(k2, n_hidden, n_hidden)
    w3, b3 = linear(k3, n_hidden, y_dim)
    return (w1, b1, w2, b2, w3, b3)


def reference_forward(t, y, params):
    del t
    w1, b1, w2, b2, w3, b3 = params
    h = jnp.tanh(y @ w1.T + b1)
    h = jnp.tanh(h @ w2.T + b2)
    return h @ w3.T + b3


if __name__ == "__main__":
    key = jax.random.PRNGKey(0)
    kp, ky1, ky2 = jax.random.split(key, 3)

    y_dim, n_hidden = 2, 4
    params = init_params(kp, y_dim=y_dim, n_hidden=n_hidden)
    t = jnp.array(0.0, jnp.float32)  # unused by forward (API parity)

    # Case 1: small, lane-padded batch (64 -> 128), single grid step.
    y1 = jax.random.normal(ky1, (64, y_dim), jnp.float32)
    out1 = jax.block_until_ready(ode_func_sin_forward(t, y1, params))
    ref1 = reference_forward(t, y1, params)
    assert out1.shape == y1.shape
    assert jnp.allclose(out1, ref1, atol=1e-5, rtol=1e-5), "mismatch vs JAX reference (B=64)"

    # Case 2: non-divisible batch size (robustness of the padding path).
    y2 = jax.random.normal(ky2, (37, y_dim), jnp.float32)
    out2 = jax.block_until_ready(ode_func_sin_forward(t, y2, params))
    ref2 = reference_forward(t, y2, params)
    assert out2.shape == y2.shape
    assert jnp.allclose(out2, ref2, atol=1e-5, rtol=1e-5), "mismatch vs JAX reference (B=37)"

    print("KERNEL_OK")
</pallas_src>

<mosaic_0001>
module attributes {stable_mosaic.version = 11 : i64} {
  func.func @_mlp_kernel(%arg0: i32, %arg1: memref<2x128xf32, #tpu.memory_space<vmem>>, %arg2: memref<4x2xf32, #tpu.memory_space<vmem>>, %arg3: memref<4x1xf32, #tpu.memory_space<vmem>>, %arg4: memref<4x4xf32, #tpu.memory_space<vmem>>, %arg5: memref<4x1xf32, #tpu.memory_space<vmem>>, %arg6: memref<2x4xf32, #tpu.memory_space<vmem>>, %arg7: memref<2x1xf32, #tpu.memory_space<vmem>>, %arg8: memref<2x128xf32, #tpu.memory_space<vmem>>) attributes {dimension_semantics = [#tpu.dimension_semantics<parallel>], iteration_bounds = array<i64: 1>, scalar_prefetch = 0 : i64, scratch_operands = 0 : i64, tpu.core_type = #tpu.core_type<tc>, window_params = [{transform_indices = @transform_0, window_bounds = array<i64: 2, 128>}, {pipeline_mode = #tpu.pipeline_mode<synchronous>, transform_indices = @transform_1, window_bounds = array<i64: 4, 2>}, {pipeline_mode = #tpu.pipeline_mode<synchronous>, transform_indices = @transform_2, window_bounds = array<i64: 4, 1>}, {pipeline_mode = #tpu.pipeline_mode<synchronous>, transform_indices = @transform_3, window_bounds = array<i64: 4, 4>}, {pipeline_mode = #tpu.pipeline_mode<synchronous>, transform_indices = @transform_4, window_bounds = array<i64: 4, 1>}, {pipeline_mode = #tpu.pipeline_mode<synchronous>, transform_indices = @transform_5, window_bounds = array<i64: 2, 4>}, {pipeline_mode = #tpu.pipeline_mode<synchronous>, transform_indices = @transform_6, window_bounds = array<i64: 2, 1>}, {transform_indices = @transform_7, window_bounds = array<i64: 2, 128>}]} {
    %c0 = arith.constant 0 : index
    %c0_0 = arith.constant 0 : index
    %0 = vector.load %arg1[%c0, %c0_0] : memref<2x128xf32, #tpu.memory_space<vmem>>, vector<2x128xf32>
    %c0_1 = arith.constant 0 : index
    %c0_2 = arith.constant 0 : index
    %1 = vector.load %arg2[%c0_1, %c0_2] : memref<4x2xf32, #tpu.memory_space<vmem>>, vector<4x2xf32>
    %c0_3 = arith.constant 0 : index
    %c0_4 = arith.constant 0 : index
    %2 = vector.load %arg3[%c0_3, %c0_4] : memref<4x1xf32, #tpu.memory_space<vmem>>, vector<4x1xf32>
    %3 = vector.extract_strided_slice %1 {offsets = [0, 0], sizes = [4, 1], strides = [1, 1]} : vector<4x2xf32> to vector<4x1xf32>
    %4 = vector.extract_strided_slice %0 {offsets = [0, 0], sizes = [1, 128], strides = [1, 1]} : vector<2x128xf32> to vector<1x128xf32>
    %5 = vector.broadcast %3 : vector<4x1xf32> to vector<4x128xf32>
    %6 = vector.broadcast %4 : vector<1x128xf32> to vector<4x128xf32>
    %7 = arith.mulf %5, %6 : vector<4x128xf32>
    %8 = vector.extract_strided_slice %1 {offsets = [0, 1], sizes = [4, 1], strides = [1, 1]} : vector<4x2xf32> to vector<4x1xf32>
    %9 = vector.extract_strided_slice %0 {offsets = [1, 0], sizes = [1, 128], strides = [1, 1]} : vector<2x128xf32> to vector<1x128xf32>
    %10 = vector.broadcast %8 : vector<4x1xf32> to vector<4x128xf32>
    %11 = vector.broadcast %9 : vector<1x128xf32> to vector<4x128xf32>
    %12 = arith.mulf %10, %11 : vector<4x128xf32>
    %13 = arith.addf %7, %12 : vector<4x128xf32>
    %14 = vector.broadcast %2 : vector<4x1xf32> to vector<4x128xf32>
    %15 = arith.addf %13, %14 : vector<4x128xf32>
    %16 = math.tanh %15 : vector<4x128xf32>
    %c0_5 = arith.constant 0 : index
    %c0_6 = arith.constant 0 : index
    %17 = vector.load %arg4[%c0_5, %c0_6] : memref<4x4xf32, #tpu.memory_space<vmem>>, vector<4x4xf32>
    %c0_7 = arith.constant 0 : index
    %c0_8 = arith.constant 0 : index
    %18 = vector.load %arg5[%c0_7, %c0_8] : memref<4x1xf32, #tpu.memory_space<vmem>>, vector<4x1xf32>
    %19 = vector.extract_strided_slice %17 {offsets = [0, 0], sizes = [4, 1], strides = [1, 1]} : vector<4x4xf32> to vector<4x1xf32>
    %20 = vector.extract_strided_slice %16 {offsets = [0, 0], sizes = [1, 128], strides = [1, 1]} : vector<4x128xf32> to vector<1x128xf32>
    %21 = vector.broadcast %19 : vector<4x1xf32> to vector<4x128xf32>
    %22 = vector.broadcast %20 : vector<1x128xf32> to vector<4x128xf32>
    %23 = arith.mulf %21, %22 : vector<4x128xf32>
    %24 = vector.extract_strided_slice %17 {offsets = [0, 1], sizes = [4, 1], strides = [1, 1]} : vector<4x4xf32> to vector<4x1xf32>
    %25 = vector.extract_strided_slice %16 {offsets = [1, 0], sizes = [1, 128], strides = [1, 1]} : vector<4x128xf32> to vector<1x128xf32>
    %26 = vector.broadcast %24 : vector<4x1xf32> to vector<4x128xf32>
    %27 = vector.broadcast %25 : vector<1x128xf32> to vector<4x128xf32>
    %28 = arith.mulf %26, %27 : vector<4x128xf32>
    %29 = arith.addf %23, %28 : vector<4x128xf32>
    %30 = vector.extract_strided_slice %17 {offsets = [0, 2], sizes = [4, 1], strides = [1, 1]} : vector<4x4xf32> to vector<4x1xf32>
    %31 = vector.extract_strided_slice %16 {offsets = [2, 0], sizes = [1, 128], strides = [1, 1]} : vector<4x128xf32> to vector<1x128xf32>
    %32 = vector.broadcast %30 : vector<4x1xf32> to vector<4x128xf32>
    %33 = vector.broadcast %31 : vector<1x128xf32> to vector<4x128xf32>
    %34 = arith.mulf %32, %33 : vector<4x128xf32>
    %35 = arith.addf %29, %34 : vector<4x128xf32>
    %36 = vector.extract_strided_slice %17 {offsets = [0, 3], sizes = [4, 1], strides = [1, 1]} : vector<4x4xf32> to vector<4x1xf32>
    %37 = vector.extract_strided_slice %16 {offsets = [3, 0], sizes = [1, 128], strides = [1, 1]} : vector<4x128xf32> to vector<1x128xf32>
    %38 = vector.broadcast %36 : vector<4x1xf32> to vector<4x128xf32>
    %39 = vector.broadcast %37 : vector<1x128xf32> to vector<4x128xf32>
    %40 = arith.mulf %38, %39 : vector<4x128xf32>
    %41 = arith.addf %35, %40 : vector<4x128xf32>
    %42 = vector.broadcast %18 : vector<4x1xf32> to vector<4x128xf32>
    %43 = arith.addf %41, %42 : vector<4x128xf32>
    %44 = math.tanh %43 : vector<4x128xf32>
    %c0_9 = arith.constant 0 : index
    %c0_10 = arith.constant 0 : index
    %45 = vector.load %arg6[%c0_9, %c0_10] : memref<2x4xf32, #tpu.memory_space<vmem>>, vector<2x4xf32>
    %c0_11 = arith.constant 0 : index
    %c0_12 = arith.constant 0 : index
    %46 = vector.load %arg7[%c0_11, %c0_12] : memref<2x1xf32, #tpu.memory_space<vmem>>, vector<2x1xf32>
    %47 = vector.extract_strided_slice %45 {offsets = [0, 0], sizes = [2, 1], strides = [1, 1]} : vector<2x4xf32> to vector<2x1xf32>
    %48 = vector.extract_strided_slice %44 {offsets = [0, 0], sizes = [1, 128], strides = [1, 1]} : vector<4x128xf32> to vector<1x128xf32>
    %49 = vector.broadcast %47 : vector<2x1xf32> to vector<2x128xf32>
    %50 = vector.broadcast %48 : vector<1x128xf32> to vector<2x128xf32>
    %51 = arith.mulf %49, %50 : vector<2x128xf32>
    %52 = vector.extract_strided_slice %45 {offsets = [0, 1], sizes = [2, 1], strides = [1, 1]} : vector<2x4xf32> to vector<2x1xf32>
    %53 = vector.extract_strided_slice %44 {offsets = [1, 0], sizes = [1, 128], strides = [1, 1]} : vector<4x128xf32> to vector<1x128xf32>
    %54 = vector.broadcast %52 : vector<2x1xf32> to vector<2x128xf32>
    %55 = vector.broadcast %53 : vector<1x128xf32> to vector<2x128xf32>
    %56 = arith.mulf %54, %55 : vector<2x128xf32>
    %57 = arith.addf %51, %56 : vector<2x128xf32>
    %58 = vector.extract_strided_slice %45 {offsets = [0, 2], sizes = [2, 1], strides = [1, 1]} : vector<2x4xf32> to vector<2x1xf32>
    %59 = vector.extract_strided_slice %44 {offsets = [2, 0], sizes = [1, 128], strides = [1, 1]} : vector<4x128xf32> to vector<1x128xf32>
    %60 = vector.broadcast %58 : vector<2x1xf32> to vector<2x128xf32>
    %61 = vector.broadcast %59 : vector<1x128xf32> to vector<2x128xf32>
    %62 = arith.mulf %60, %61 : vector<2x128xf32>
    %63 = arith.addf %57, %62 : vector<2x128xf32>
    %64 = vector.extract_strided_slice %45 {offsets = [0, 3], sizes = [2, 1], strides = [1, 1]} : vector<2x4xf32> to vector<2x1xf32>
    %65 = vector.extract_strided_slice %44 {offsets = [3, 0], sizes = [1, 128], strides = [1, 1]} : vector<4x128xf32> to vector<1x128xf32>
    %66 = vector.broadcast %64 : vector<2x1xf32> to vector<2x128xf32>
    %67 = vector.broadcast %65 : vector<1x128xf32> to vector<2x128xf32>
    %68 = arith.mulf %66, %67 : vector<2x128xf32>
    %69 = arith.addf %63, %68 : vector<2x128xf32>
    %70 = vector.broadcast %46 : vector<2x1xf32> to vector<2x128xf32>
    %71 = arith.addf %69, %70 : vector<2x128xf32>
    %c0_13 = arith.constant 0 : index
    %c0_14 = arith.constant 0 : index
    %72 = vector.load %arg8[%c0_13, %c0_14] : memref<2x128xf32, #tpu.memory_space<vmem>>, vector<2x128xf32>
    tpu.vector_store %arg8[%c0_13, %c0_14], %71 {strides = array<i32>} : memref<2x128xf32, #tpu.memory_space<vmem>>, vector<2x128xf32>,
    return
  }
  func.func @transform_0(%arg0: i32) -> (i32, i32) {
    %c0_i32 = arith.constant 0 : i32
    %c0_i32_0 = arith.constant 0 : i32
    return %c0_i32, %arg0 : i32, i32
  }
  func.func @transform_1(%arg0: i32) -> (i32, i32) {
    %c0_i32 = arith.constant 0 : i32
    %c0_i32_0 = arith.constant 0 : i32
    %c0_i32_1 = arith.constant 0 : i32
    return %c0_i32, %c0_i32_0 : i32, i32
  }
  func.func @transform_2(%arg0: i32) -> (i32, i32) {
    %c0_i32 = arith.constant 0 : i32
    %c0_i32_0 = arith.constant 0 : i32
    %c0_i32_1 = arith.constant 0 : i32
    return %c0_i32, %c0_i32_0 : i32, i32
  }
  func.func @transform_3(%arg0: i32) -> (i32, i32) {
    %c0_i32 = arith.constant 0 : i32
    %c0_i32_0 = arith.constant 0 : i32
    %c0_i32_1 = arith.constant 0 : i32
    return %c0_i32, %c0_i32_0 : i32, i32
  }
  func.func @transform_4(%arg0: i32) -> (i32, i32) {
    %c0_i32 = arith.constant 0 : i32
    %c0_i32_0 = arith.constant 0 : i32
    %c0_i32_1 = arith.constant 0 : i32
    return %c0_i32, %c0_i32_0 : i32, i32
  }
  func.func @transform_5(%arg0: i32) -> (i32, i32) {
    %c0_i32 = arith.constant 0 : i32
    %c0_i32_0 = arith.constant 0 : i32
    %c0_i32_1 = arith.constant 0 : i32
    return %c0_i32, %c0_i32_0 : i32, i32
  }
  func.func @transform_6(%arg0: i32) -> (i32, i32) {
    %c0_i32 = arith.constant 0 : i32
    %c0_i32_0 = arith.constant 0 : i32
    %c0_i32_1 = arith.constant 0 : i32
    return %c0_i32, %c0_i32_0 : i32, i32
  }
  func.func @transform_7(%arg0: i32) -> (i32, i32) {
    %c0_i32 = arith.constant 0 : i32
    %c0_i32_0 = arith.constant 0 : i32
    return %c0_i32, %arg0 : i32, i32
  }
}

</mosaic_0001>

<bundles_post_ra>
// kernel: ode_func_sin_forward.1
= control target key start
LH: loop header
LB: loop body
LE: loop exit
PB: predicated region body
PF: predicated region fallthrough
CT: control target
= control target key end

     0   :  { %v179_v0 = vmov 0   ;;  %v180_v4 = vmov 1   ;;  %v181_v5 = vmov 2   ;;  %v182_v7 = vmov 3   ;;  %s247_s1 = inlined_call_operand.vmem [shape: f32[4,2], index: 1, kind: input, shape index: {}]   ;;  %s248_s2 = inlined_call_operand.vmem [shape: f32[4,1], index: 2, kind: input, shape index: {}]   ;;  %s249_s3 = inlined_call_operand.vmem [shape: f32[4,4], index: 3, kind: input, shape index: {}]   ;;  %s250_s5 = inlined_call_operand.vmem [shape: f32[2,4], index: 5, kind: input, shape index: {}]   ;;  %s251_s4 = inlined_call_operand.vmem [shape: f32[4,1], index: 4, kind: input, shape index: {}]   ;;  %s252_s6 = inlined_call_operand.vmem [shape: f32[2,1], index: 6, kind: input, shape index: {}]   ;;  %s253_s0 = inlined_call_operand.vmem [shape: f32[2,128], index: 0, kind: input, shape index: {}]   ;;  %s254_s7 = inlined_call_operand.vmem [shape: f32[2,128], index: 7, kind: output, shape index: {}]  }
   0x1   :  { %162 = vset.pattern.permute.xlu0 %v179_v0  ;;  %v27_v1 = vld [vmem:[%s247_s1] sm:$0xf]  ;;  %164 = vset.pattern.permute.xlu1 %v179_v0  ;;  %v34_v10 = vlaneseq }
   0x2   :  { %v28_v2 = vld [vmem:[%s248_s2] sm:$0xf]  ;;  %31 = vperm.xlu0 %162, %v27_v1  }
   0x3   :  { %51 = vperm.xlu1 %164, %v28_v2   ;;  %v56_v3 = vld [vmem:[%s249_s3] sm:$0xf]  ;;  %v35_v11 = vshrl.u32 %v34_v10, 7 }
   0x4   :  { %v105_v6 = vld [vmem:[%s250_s5] sm:$0x3] }
   0x5   :  { %v57_v8 = vld [vmem:[%s251_s4] sm:$0xf]  ;;  %v36_v12 = vsub.s32 0, %v35_v11  ;;  %v45_v13 = vsub.s32 1, %v35_v11  ;;  %v84_v25 = vsub.s32 2, %v35_v11  ;;  %v94_v27 = vsub.s32 3, %v35_v11 }
   0x6   :  { %163 = vset.pattern.permute.xlu0 %v180_v4  ;;  %v106_v9 = vld [vmem:[%s252_s6] sm:$0x3] }
   0x7   :  { %60 = vperm.xlu1 %164, %v56_v3   ;;  %40 = vperm.xlu0 %163, %v27_v1   ;;  %v26_v14 = vld [vmem:[%s253_s0] sm:$0x3] }
   0x8   :  { %v37_v16 = vrot.slane %v26_v14, %v36_v12  ;;  %v46_v17 = vrot.slane %v26_v14, %v45_v13 }
   0xb   :  { %165 = vset.pattern.permute.xlu1 %v180_v4  ;;  %166 = vset.pattern.permute.xlu0 %v181_v5 }
   0xc   :  { %69 = vperm.xlu1 %165, %v56_v3   ;;  %79 = vperm.xlu0 %166, %v56_v3  }
  0x10   :  { %167 = vset.pattern.permute.xlu1 %v182_v7  ;;  %169 = vset.pattern.permute.xlu0 %v179_v0 }
  0x11   :  { %89 = vperm.xlu1 %167, %v56_v3   ;;  %109 = vperm.xlu0 %169, %v105_v6  }
  0x15   :  { %168 = vset.pattern.permute.xlu1 %v179_v0  ;;  %172 = vset.pattern.permute.xlu0 %v182_v7 }
  0x16   :  { %100 = vperm.xlu1 %168, %v57_v8   ;;  %138 = vperm.xlu0 %172, %v105_v6  }
  0x1a   :  { %170 = vset.pattern.permute.xlu1 %v180_v4  ;;  %174 = vset.pattern.permute.xlu0 %v179_v0 }
  0x1b   :  { %118 = vperm.xlu1 %170, %v105_v6  }
  0x1f   :  { %171 = vset.pattern.permute.xlu1 %v181_v5 }
  0x20   :  { %128 = vperm.xlu1 %171, %v105_v6  }
  0x24   :  { %173 = vset.pattern.permute.xlu1 %v179_v0 }
  0x25   :  { %149 = vperm.xlu1 %173, %v106_v9  }
  0x81   :  { %v32_v15 = vpop.permute.xlu0 %31 }
  0x82   :  { %v38_v19 = vmul.f32 %v37_v16, %v32_v15  ;;  %v52_v22 = vpop.permute.xlu1 %51 }
  0x86   :  { %v41_v18 = vpop.permute.xlu0 %40  ;;  %v61_v24 = vpop.permute.xlu1 %60 }
  0x87   :  { %v47_v20 = vmul.f32 %v46_v17, %v41_v18 }
  0x89   :  { %v48_v21 = vadd.f32 %v47_v20, %v38_v19 }
  0x8b   :  { %v54_v23 = vadd.f32 %v52_v22, %v48_v21  ;;  %v70_v26 = vpop.permute.xlu1 %69  ;;  %v80_v32 = vpop.permute.xlu0 %79 }
  0x8d   :  { %175 = vtanh.f32 %v54_v23 }
  0x90   :  { %v90_v36 = vpop.permute.xlu1 %89  ;;  %v110_v45 = vpop.permute.xlu0 %109 }
  0x95   :  { %v101_v41 = vpop.permute.xlu1 %100  ;;  %v139_v54 = vpop.permute.xlu0 %138 }
  0x97   :  { %v176_v28 = vpop.eup %175 }
  0x98   :  { %v66_v29 = vrot.slane %v176_v28, %v36_v12  ;;  %v75_v30 = vrot.slane %v176_v28, %v45_v13  ;;  %v85_v31 = vrot.slane %v176_v28, %v84_v25  ;;  %v95_v35 = vrot.slane %v176_v28, %v94_v27 }
  0x9a   :  { %v67_v33 = vmul.f32 %v66_v29, %v61_v24  ;;  %v76_v34 = vmul.f32 %v75_v30, %v70_v26  ;;  %v86_v38 = vmul.f32 %v85_v31, %v80_v32  ;;  %v96_v39 = vmul.f32 %v95_v35, %v90_v36  ;;  %v119_v44 = vpop.permute.xlu1 %118 }
  0x9c   :  { %v77_v37 = vadd.f32 %v76_v34, %v67_v33 }
  0x9e   :  { %v87_v40 = vadd.f32 %v86_v38, %v77_v37 }
  0x9f   :  { %v129_v50 = vpop.permute.xlu1 %128 }
  0xa0   :  { %v97_v42 = vadd.f32 %v96_v39, %v87_v40 }
  0xa2   :  { %v103_v43 = vadd.f32 %v101_v41, %v97_v42 }
  0xa4   :  { %177 = vtanh.f32 %v103_v43  ;;  %v150_v59 = vpop.permute.xlu1 %149 }
  0xae   :  { %v178_v46 = vpop.eup %177 }
  0xaf   :  { %v124_v47 = vrot.slane %v178_v46, %v45_v13  ;;  %v115_v48 = vrot.slane %v178_v46, %v36_v12  ;;  %v134_v49 = vrot.slane %v178_v46, %v84_v25  ;;  %v144_v53 = vrot.slane %v178_v46, %v94_v27 }
  0xb1   :  { %v125_v51 = vmul.f32 %v124_v47, %v119_v44  ;;  %v116_v52 = vmul.f32 %v115_v48, %v110_v45  ;;  %v135_v56 = vmul.f32 %v134_v49, %v129_v50  ;;  %v145_v58 = vmul.f32 %v144_v53, %v139_v54 }
  0xb3   :  { %v126_v55 = vadd.f32 %v125_v51, %v116_v52 }
  0xb5   :  { %v136_v57 = vadd.f32 %v135_v56, %v126_v55 }
  0xb7   :  { %v146_v60 = vadd.f32 %v145_v58, %v136_v57 }
  0xb9   :  { %v152_v61 = vadd.f32 %v150_v59, %v146_v60 }
  0xbb   :  { %153 = vst [vmem:[%s254_s7] sm:$0x3] %v152_v61 }

</bundles_post_ra>
